<compile_context>
chip_gen: v5e
topology: v5e:2x2
jax: 0.10.0
libtpu: 0.0.40
codegen_flags: <defaults>
</compile_context>

<pallas_src>
import functools

import jax
import jax.numpy as jnp
from jax.experimental import pallas as pl
from jax.experimental.pallas import tpu as pltpu


# ----------------------------- tiling helpers ------------------------------

def _pick_tile(dim, candidates):
    """Largest candidate that evenly divides `dim`; else the full dim."""
    for c in candidates:
        if c <= dim and dim % c == 0:
            return c
    return dim


def select_tiles(batch, k_dim, n_dim):
    tm = _pick_tile(batch, (256, 128, 64, 32, 16, 8))   # rows: big, but keep grid >= 2 when possible
    tn = _pick_tile(n_dim, (512, 256, 128))             # lane-dense output tiles
    tk = _pick_tile(k_dim, (512, 256, 128))             # K-reduction chunk
    return tm, tn, tk


# ----------------------------- weight packing ------------------------------

def pack_gated_dense_params(wh, bh, wg, bg, tn):
    """Pack the two PyTorch Linear layers into one fused weight/bias.

    wh, wg: (N, K) PyTorch Linear layout.  bh, bg: (N,).
    Returns w_packed (K, 2N), b_packed (1, 2N) where, for each column tile j
    of width tn, columns [2j*tn, 2j*tn+tn) hold Wh^T and the next tn columns
    hold Wg^T — so one contiguous (K, 2*tn) block feeds one fused matmul.
    In production this runs once at module init, not per call.
    """
    n_dim, k_dim = wh.shape
    nj = n_dim // tn
    wh_t = wh.T.reshape(k_dim, nj, 1, tn)
    wg_t = wg.T.reshape(k_dim, nj, 1, tn)
    w_packed = jnp.concatenate([wh_t, wg_t], axis=2).reshape(k_dim, 2 * n_dim)
    b_packed = jnp.concatenate(
        [bh.reshape(nj, 1, tn), bg.reshape(nj, 1, tn)], axis=1
    ).reshape(1, 2 * n_dim)
    return w_packed, b_packed


# --------------------------------- kernel ----------------------------------

def _gated_dense_kernel(x_ref, w_ref, b_ref, o_ref, acc_ref, *, tn, activation):
    k = pl.program_id(2)

    @pl.when(k == 0)
    def _init():
        acc_ref[...] = jnp.zeros_like(acc_ref)

    # One fused MXU matmul per step: (tm, tk) @ (tk, 2*tn), f32 accumulation.
    acc_ref[...] += jnp.dot(x_ref[...], w_ref[...],
                            preferred_element_type=jnp.float32)

    @pl.when(k == pl.num_programs(2) - 1)
    def _finalize():
        y = acc_ref[...] + b_ref[...]
        h = y[:, :tn]
        g = y[:, tn:]
        g = jnp.maximum(g, 0.0) if activation == "relu" else jax.nn.sigmoid(g)
        # dropout(p=0) is the identity.
        o_ref[...] = (h * g).astype(o_ref.dtype)


# -------------------------------- wrappers ---------------------------------

def gated_dense_packed(x, w_packed, b_packed, *, tm, tn, tk, activation="relu"):
    """x: (B, K); w_packed: (K, 2N); b_packed: (1, 2N) — pre-packed params."""
    batch, k_dim = x.shape
    n_dim = w_packed.shape[1] // 2

    grid = (batch // tm, n_dim // tn, k_dim // tk)

    flops = 2 * batch * k_dim * (2 * n_dim) + 3 * batch * n_dim
    bytes_accessed = 4 * (batch * k_dim + k_dim * 2 * n_dim + 2 * n_dim
                          + batch * n_dim)

    kernel = functools.partial(_gated_dense_kernel, tn=tn, activation=activation)

    return pl.pallas_call(
        kernel,
        out_shape=jax.ShapeDtypeStruct((batch, n_dim), x.dtype),
        grid_spec=pltpu.PrefetchScalarGridSpec(
            num_scalar_prefetch=0,
            grid=grid,
            in_specs=[
                pl.BlockSpec((tm, tk), lambda i, j, k: (i, k)),       # x row/K tile
                pl.BlockSpec((tk, 2 * tn), lambda i, j, k: (k, j)),   # fused W tile
                pl.BlockSpec((1, 2 * tn), lambda i, j, k: (0, j)),    # fused bias tile
            ],
            out_specs=pl.BlockSpec((tm, tn), lambda i, j, k: (i, j)),
            scratch_shapes=[pltpu.VMEM((tm, 2 * tn), jnp.float32)],   # f32 accumulator
        ),
        compiler_params=pltpu.CompilerParams(
            dimension_semantics=("parallel", "parallel", "arbitrary")),
        cost_estimate=pl.CostEstimate(
            flops=flops, transcendentals=0, bytes_accessed=bytes_accessed),
    )(x, w_packed, b_packed)


def gated_dense(x, wh, bh, wg, bg, *, activation="relu"):
    """Convenience wrapper taking PyTorch-layout params (packs per call; in a
    real deployment call pack_gated_dense_params once at init)."""
    batch, k_dim = x.shape
    n_dim = wh.shape[0]
    tm, tn, tk = select_tiles(batch, k_dim, n_dim)
    w_packed, b_packed = pack_gated_dense_params(wh, bh, wg, bg, tn)
    return gated_dense_packed(x, w_packed, b_packed, tm=tm, tn=tn, tk=tk,
                              activation=activation)


# ---------------------------------- demo -----------------------------------

if __name__ == "__main__":
    key = jax.random.PRNGKey(0)

    def run_case(batch, input_size, output_size):
        case_key = jax.random.fold_in(key, batch * 7919 + input_size * 31 + output_size)
        k_x, k_wh, k_bh, k_wg, k_bg = jax.random.split(case_key, 5)
        bound = 1.0 / jnp.sqrt(input_size)  # PyTorch nn.Linear default init range
        x = jax.random.normal(k_x, (batch, input_size), dtype=jnp.float32)
        wh = jax.random.uniform(k_wh, (output_size, input_size), jnp.float32, -bound, bound)
        bh = jax.random.uniform(k_bh, (output_size,), jnp.float32, -bound, bound)
        wg = jax.random.uniform(k_wg, (output_size, input_size), jnp.float32, -bound, bound)
        bg = jax.random.uniform(k_bg, (output_size,), jnp.float32, -bound, bound)

        out = jax.block_until_ready(gated_dense(x, wh, bh, wg, bg))

        # Pure-JAX reference check.
        h_ref = x @ wh.T + bh
        g_ref = jnp.maximum(x @ wg.T + bg, 0.0)
        ref = h_ref * g_ref
        assert out.shape == (batch, output_size)
        assert jnp.allclose(out, ref, atol=1e-4, rtol=1e-4), (
            f"mismatch at B={batch} K={input_size} N={output_size}")

    run_case(8, 32, 64)      # toy module shape (single-tile path)
    run_case(128, 384, 384)  # exercises K-accumulation + N-tiling grid (1,3,3)

    print("KERNEL_OK")
</pallas_src>

<mosaic_0001>
module attributes {stable_mosaic.version = 11 : i64} {
  func.func @_gated_dense_kernel(%arg0: i32, %arg1: i32, %arg2: i32, %arg3: memref<8x32xf32, #tpu.memory_space<vmem>>, %arg4: memref<32x128xf32, #tpu.memory_space<vmem>>, %arg5: memref<1x128xf32, #tpu.memory_space<vmem>>, %arg6: memref<8x64xf32, #tpu.memory_space<vmem>>, %arg7: memref<8x128xf32, #tpu.memory_space<vmem>>) attributes {dimension_semantics = [#tpu.dimension_semantics<parallel>, #tpu.dimension_semantics<parallel>, #tpu.dimension_semantics<arbitrary>], iteration_bounds = array<i64: 1, 1, 1>, scalar_prefetch = 0 : i64, scratch_operands = 1 : i64, tpu.core_type = #tpu.core_type<tc>, window_params = [{transform_indices = @transform_0, window_bounds = array<i64: 8, 32>}, {transform_indices = @transform_1, window_bounds = array<i64: 32, 128>}, {transform_indices = @transform_2, window_bounds = array<i64: 1, 128>}, {transform_indices = @transform_3, window_bounds = array<i64: 8, 64>}]} {
    %c0_i32 = arith.constant 0 : i32
    %0 = arith.cmpi eq, %arg2, %c0_i32 : i32
    %1 = arith.extui %0 : i1 to i32
    %c0_i32_0 = arith.constant 0 : i32
    %2 = arith.cmpi ne, %1, %c0_i32_0 : i32
    scf.if %2 {
      %cst_10 = arith.constant 0.000000e+00 : f32
      %12 = vector.broadcast %cst_10 : f32 to vector<8x128xf32>
      %c0_11 = arith.constant 0 : index
      %c0_12 = arith.constant 0 : index
      %13 = vector.load %arg7[%c0_11, %c0_12] : memref<8x128xf32, #tpu.memory_space<vmem>>, vector<8x128xf32>
      tpu.vector_store %arg7[%c0_11, %c0_12], %12 {strides = array<i32>} : memref<8x128xf32, #tpu.memory_space<vmem>>, vector<8x128xf32>,
    } else {
    }
    %c0 = arith.constant 0 : index
    %c0_1 = arith.constant 0 : index
    %3 = vector.load %arg7[%c0, %c0_1] : memref<8x128xf32, #tpu.memory_space<vmem>>, vector<8x128xf32>
    %c0_2 = arith.constant 0 : index
    %c0_3 = arith.constant 0 : index
    %4 = vector.load %arg3[%c0_2, %c0_3] : memref<8x32xf32, #tpu.memory_space<vmem>>, vector<8x32xf32>
    %c0_4 = arith.constant 0 : index
    %c0_5 = arith.constant 0 : index
    %5 = vector.load %arg4[%c0_4, %c0_5] : memref<32x128xf32, #tpu.memory_space<vmem>>, vector<32x128xf32>
    %cst = arith.constant dense<0.000000e+00> : vector<8x128xf32>
    %6 = tpu.matmul %4, %5, %cst {dimension_numbers = #tpu.dot_dimension_numbers<[1], [0], [0], [1], [0, 0, 1, 1], [], []>} : vector<8x32xf32>, vector<32x128xf32>, vector<8x128xf32> -> vector<8x128xf32>
    %7 = arith.addf %3, %6 : vector<8x128xf32>
    %c0_6 = arith.constant 0 : index
    %c0_7 = arith.constant 0 : index
    %8 = vector.load %arg7[%c0_6, %c0_7] : memref<8x128xf32, #tpu.memory_space<vmem>>, vector<8x128xf32>
    tpu.vector_store %arg7[%c0_6, %c0_7], %7 {strides = array<i32>} : memref<8x128xf32, #tpu.memory_space<vmem>>, vector<8x128xf32>,
    %c0_i32_8 = arith.constant 0 : i32
    %9 = arith.cmpi eq, %arg2, %c0_i32_8 : i32
    %10 = arith.extui %9 : i1 to i32
    %c0_i32_9 = arith.constant 0 : i32
    %11 = arith.cmpi ne, %10, %c0_i32_9 : i32
    scf.if %11 {
      %c0_10 = arith.constant 0 : index
      %c0_11 = arith.constant 0 : index
      %12 = vector.load %arg7[%c0_10, %c0_11] : memref<8x128xf32, #tpu.memory_space<vmem>>, vector<8x128xf32>
      %c0_12 = arith.constant 0 : index
      %c0_13 = arith.constant 0 : index
      %13 = vector.load %arg5[%c0_12, %c0_13] : memref<1x128xf32, #tpu.memory_space<vmem>>, vector<1x128xf32>
      %14 = vector.broadcast %13 : vector<1x128xf32> to vector<8x128xf32>
      %15 = arith.addf %12, %14 : vector<8x128xf32>
      %16 = vector.extract_strided_slice %15 {offsets = [0, 0], sizes = [8, 64], strides = [1, 1]} : vector<8x128xf32> to vector<8x64xf32>
      %17 = vector.extract_strided_slice %15 {offsets = [0, 64], sizes = [8, 64], strides = [1, 1]} : vector<8x128xf32> to vector<8x64xf32>
      %cst_14 = arith.constant 0.000000e+00 : f32
      %18 = vector.broadcast %cst_14 : f32 to vector<8x64xf32>
      %19 = arith.maximumf %17, %18 : vector<8x64xf32>
      %20 = arith.mulf %16, %19 : vector<8x64xf32>
      %c0_15 = arith.constant 0 : index
      %c0_16 = arith.constant 0 : index
      %21 = vector.load %arg6[%c0_15, %c0_16] : memref<8x64xf32, #tpu.memory_space<vmem>>, vector<8x64xf32>
      tpu.vector_store %arg6[%c0_15, %c0_16], %20 {strides = array<i32>} : memref<8x64xf32, #tpu.memory_space<vmem>>, vector<8x64xf32>,
    } else {
    }
    return
  }
  func.func @transform_0(%arg0: i32, %arg1: i32, %arg2: i32) -> (i32, i32) {
    %c0_i32 = arith.constant 0 : i32
    return %arg0, %arg2 : i32, i32
  }
  func.func @transform_1(%arg0: i32, %arg1: i32, %arg2: i32) -> (i32, i32) {
    %c0_i32 = arith.constant 0 : i32
    return %arg2, %arg1 : i32, i32
  }
  func.func @transform_2(%arg0: i32, %arg1: i32, %arg2: i32) -> (i32, i32) {
    %c0_i32 = arith.constant 0 : i32
    %c0_i32_0 = arith.constant 0 : i32
    return %c0_i32, %arg1 : i32, i32
  }
  func.func @transform_3(%arg0: i32, %arg1: i32, %arg2: i32) -> (i32, i32) {
    %c0_i32 = arith.constant 0 : i32
    return %arg0, %arg1 : i32, i32
  }
}

</mosaic_0001>

<bundles_post_ra>
// kernel: tpu_custom_call.1
= control target key start
LH: loop header
LB: loop body
LE: loop exit
PB: predicated region body
PF: predicated region fallthrough
CT: control target
= control target key end

     0   :  { %8 = vsyncpa [#allocation4], 0  ;;  %s241_s0 = inlined_call_operand.hbm [shape: f32[8,32], index: 0, kind: input, shape index: {}]   ;;  %s242_s1 = inlined_call_operand.hbm [shape: f32[32,128], index: 1, kind: input, shape index: {}]   ;;  %s243_s2 = inlined_call_operand.vmem [shape: f32[1,128], index: 2, kind: input, shape index: {}]   ;;  %s244_s3 = inlined_call_operand.hbm [shape: f32[8,64], index: 3, kind: output, shape index: {}]  }
   0x1   :  { %9 = vsyncpa [#allocation7], 0 }
   0x2   :  { %10 = vsyncpa [#allocation5], 0  ;;  %s16_s14 = sshll.u32 %s241_s0, 4  ;;  %s203_s15 = smov [#allocation3]   ;;  %s17_s14 = int_to_ptr.hbm [resolvable:$true] %s16_s14 }
   0x3   :  { %s18_s16 = sshll.u32 %s203_s15, 4  ;;  %s26_s19 = sshll.u32 %s242_s1, 4  ;;  %s19_s16 = int_to_ptr.vmem [resolvable:$true] %s18_s16  ;;  %s27_s19 = int_to_ptr.hbm [resolvable:$true] %s26_s19 }
   0x4   :  { %21 = dma.hbm_to_vmem [thread:$0]  %s17_s14, 128, %s19_s16, [#allocation4]  }
   0x5   :  { %s204_s20 = smov [#allocation6]   ;;  %s205_s22 = smov 128  }
   0x6   :  { %s28_s21 = sshll.u32 %s204_s20, 4  ;;  %s206_s23 = smov 8   ;;  %s29_s21 = int_to_ptr.vmem [resolvable:$true] %s28_s21 }
   0x7   :  { %34 = dma.hbm_to_vmem [thread:$0]  %s27_s19, 512, %s29_s21, [#allocation7], %s205_s22, %s205_s22, %s206_s23  }
   0x8   :  { %197 = dma.done.wait [#allocation4], 128  }
   0x9   :  { %198 = vsyncadd [#allocation4], 4294967168 }
   0xa   :  { %199 = dma.done.wait [#allocation7], 512  }
   0xb   :  { %200 = vsyncadd [#allocation7], 4294966784  ;;  %v55_v0 = vld [vmem:[#allocation6 + $0x18] sm:$0xff]  ;;  %v54_v1 = vld [vmem:[#allocation6 + $0x10] sm:$0xff]  ;;  %vm56_vm0 = vcmask 261120   ;;  %s207_s24 = smov 64  }
   0xc   :  { %72 = vmatpush.msra.mxu0 %v55_v0  ;;  %v53_v2 = vld [vmem:[#allocation6 + $0x8] sm:$0xff]  ;;  %v52_v3 = vld [vmem:[#allocation6] sm:$0xff]  ;;  %v51_v4 = vld [vmem:[#allocation3] sm:$0xff]  ;;  %s208_s25 = smov [#allocation8]   ;;  %s106_s29 = sshll.u32 %s244_s3, 4  ;;  %vm97_vm1 = vcmask 523264   ;;  %s107_s29 = int_to_ptr.hbm [resolvable:$true] %s106_s29 }
   0xd   :  { %v124_v5 = vld [vmem:[%s243_s2] ss:$0 sm:$0xff]  ;;  %s104_s26 = sshll.u32 %s208_s25, 4  ;;  %s105_s26 = int_to_ptr.vmem [resolvable:$true] %s104_s26 }
   0xe   :  { %73 = vmatpush.msra.mxu0 %v54_v1 }
  0x10   :  { %74 = vmatpush.msra.mxu0 %v53_v2 }
  0x12   :  { %75 = vmatpush.msra.mxu0 %v52_v3 }
  0x13   :  { %117 = vmatmul.msk.f32.vlgmr.msra.gmra.mxu0 %vm56_vm0, %v51_v4 }
  0x90   :  { %v77_v6 = vpop.f32.mrf.mxu0 }
  0x91   :  { %v90_v7 = vadd.f32 %v124_v5, %v77_v6 }
  0x93   :  { %v91_v8 = vmax.f32 %v90_v7, 0.0 }
  0x95   :  { %93 = vrot.lane.b32.xlu0 %v91_v8, %s207_s24 }
 0x107   :  { %v94_v9 = vpop.permute.xlu0 %93 }
 0x108   :  { %v96_v10 = vmul.f32 %v94_v9, %v90_v7 }
 0x10a   :  { %98 = vst.msk [vmem:[#allocation8] sm:$0xff] %vm97_vm1, %v96_v10 }
 0x10b   :  { %109 = dma.vmem_to_hbm [thread:$0]  %s105_s26, 128, %s107_s29, [#allocation5]  }
 0x10c   :  { %201 = dma.done.wait [#allocation5], 128  }
 0x10d   :  { %202 = vsyncadd [#allocation5], 4294967168 }
 0x10e   :  { %114 = vsyncpa [#allocation4], 1 }
 0x10f   :  { %115 = vsyncpa [#allocation7], 1 }
 0x110   :  { %116 = vsyncpa [#allocation5], 1 }

</bundles_post_ra>
